<compile_context>
chip_gen: v5e
topology: v5e:2x2
jax: 0.10.0
libtpu: 0.0.40
codegen_flags: <defaults>
</compile_context>

<pallas_src>
import functools

import jax
import jax.numpy as jnp
from jax.experimental import pallas as pl
from jax.experimental.pallas import tpu as pltpu


# ----------------------------------------------------------------------------
# Path 1: identity (preferred).  No data movement, no kernel launch.
# ----------------------------------------------------------------------------
def lstm_forward(x):
    """Identity forward pass of the `LSTM` module.

    A pallas_call would only add launch overhead and a fusion barrier for a
    no-op, so we return the input directly.  Callers that want the output to
    reuse the input buffer should donate it (jax.jit(..., donate_argnums=0)).
    """
    return x


# ----------------------------------------------------------------------------
# Path 2: identity that materializes a distinct output buffer.
# Direct HBM->HBM DMA(s) — no VMEM round-trip, runs at HBM bandwidth on
# v5e / v6e / v7x, no VMEM-capacity limit for large inputs.
# ----------------------------------------------------------------------------
_CHUNK_THRESHOLD_BYTES = 16 * 1024 * 1024  # only chunk copies above ~16 MiB


def _num_copy_chunks(shape, itemsize):
    """Pick 1, 2 or 4 DMA chunks along the leading dim (static, trace-time)."""
    if not shape:
        return 1
    total_bytes = itemsize
    for d in shape:
        total_bytes *= d
    if total_bytes <= _CHUNK_THRESHOLD_BYTES:
        return 1
    lead = shape[0]
    for n in (4, 2):
        if lead % n == 0 and lead >= n:
            return n
    return 1


def _dma_identity_kernel(x_hbm, o_hbm, sems, *, n_chunks, rows_per_chunk):
    if n_chunks == 1:
        cp = pltpu.make_async_copy(x_hbm, o_hbm, sems.at[0])
        cp.start()
        cp.wait()
        return
    # Start all chunked DMAs (keeps several descriptors in flight), then wait.
    copies = []
    for c in range(n_chunks):
        off = c * rows_per_chunk
        cp = pltpu.make_async_copy(
            x_hbm.at[pl.ds(off, rows_per_chunk)],
            o_hbm.at[pl.ds(off, rows_per_chunk)],
            sems.at[c],
        )
        cp.start()
        copies.append(cp)
    for cp in copies:
        cp.wait()


def lstm_forward_copy(x):
    """Identity forward pass producing a fresh output buffer via HBM->HBM DMA."""
    itemsize = jnp.dtype(x.dtype).itemsize
    n_chunks = _num_copy_chunks(x.shape, itemsize)
    rows_per_chunk = (x.shape[0] // n_chunks) if (x.ndim > 0 and n_chunks > 1) else 0
    nbytes = x.size * itemsize

    kernel = functools.partial(
        _dma_identity_kernel, n_chunks=n_chunks, rows_per_chunk=rows_per_chunk
    )
    return pl.pallas_call(
        kernel,
        out_shape=jax.ShapeDtypeStruct(x.shape, x.dtype),
        in_specs=[pl.BlockSpec(memory_space=pl.ANY)],   # raw HBM ref, no auto-DMA
        out_specs=pl.BlockSpec(memory_space=pl.ANY),    # raw HBM ref, no auto-DMA
        scratch_shapes=[pltpu.SemaphoreType.DMA((n_chunks,))],
        cost_estimate=pl.CostEstimate(
            flops=0, transcendentals=0, bytes_accessed=2 * nbytes
        ),
    )(x)


class LSTM:
    """JAX/Pallas counterpart of the reference PyTorch module.

    The PyTorch __init__ stores `hidden_state` but creates no parameters and
    the forward pass ignores it (pure identity), so there are no weights and
    no recurrence to implement.
    """

    def __init__(self, hidden_state):
        self.hidden_state = hidden_state

    def __call__(self, x):
        return lstm_forward(x)


if __name__ == "__main__":
    key = jax.random.PRNGKey(0)
    # Small NCHW input: batch=2, channels=4, spatial=16x16.
    x = jax.random.normal(key, (2, 4, 16, 16), dtype=jnp.float32)

    model = LSTM(hidden_state=32)

    # Identity path (no data movement at all).
    y = jax.block_until_ready(model(x))
    assert y.shape == x.shape and y.dtype == x.dtype
    assert bool(jnp.all(y == x))

    # Materialized-copy path (distinct output buffer via HBM->HBM DMA kernel).
    y2 = jax.block_until_ready(lstm_forward_copy(x))
    assert y2.shape == x.shape and y2.dtype == x.dtype
    assert bool(jnp.all(y2 == x))

    print("KERNEL_OK")
</pallas_src>

<mosaic_0001>
module attributes {stable_mosaic.version = 11 : i64} {
  func.func @_dma_identity_kernel(%arg0: memref<2x4x16x16xf32, #tpu.memory_space<any>>, %arg1: memref<2x4x16x16xf32, #tpu.memory_space<any>>, %arg2: memref<1x!tpu.dma_semaphore, #tpu.memory_space<semaphore_mem>>) attributes {dimension_semantics = [], scalar_prefetch = 0 : i64, scratch_operands = 1 : i64, tpu.core_type = #tpu.core_type<tc>} {
    %c0_i32 = arith.constant 0 : i32
    %0 = tpu.memref_slice %arg2[%c0_i32] : memref<1x!tpu.dma_semaphore, #tpu.memory_space<semaphore_mem>> -> memref<1x!tpu.dma_semaphore, #tpu.memory_space<semaphore_mem>>
    %1 = tpu.memref_squeeze %0 : memref<1x!tpu.dma_semaphore, #tpu.memory_space<semaphore_mem>> -> memref<!tpu.dma_semaphore, #tpu.memory_space<semaphore_mem>>
    tpu.enqueue_dma source(%arg0 : memref<2x4x16x16xf32, #tpu.memory_space<any>>) target(%arg1 : memref<2x4x16x16xf32, #tpu.memory_space<any>>) target_semaphore(%1 : memref<!tpu.dma_semaphore, #tpu.memory_space<semaphore_mem>>)
    %c0_i32_0 = arith.constant 0 : i32
    %2 = tpu.memref_slice %arg2[%c0_i32_0] : memref<1x!tpu.dma_semaphore, #tpu.memory_space<semaphore_mem>> -> memref<1x!tpu.dma_semaphore, #tpu.memory_space<semaphore_mem>>
    %3 = tpu.memref_squeeze %2 : memref<1x!tpu.dma_semaphore, #tpu.memory_space<semaphore_mem>> -> memref<!tpu.dma_semaphore, #tpu.memory_space<semaphore_mem>>
    tpu.wait_dma2 semaphore(%3 : memref<!tpu.dma_semaphore, #tpu.memory_space<semaphore_mem>>) src(%arg0 : memref<2x4x16x16xf32, #tpu.memory_space<any>>) dst(%arg1 : memref<2x4x16x16xf32, #tpu.memory_space<any>>)
    return
  }
}

</mosaic_0001>

<bundles_post_ra>
// kernel: tpu_custom_call.1
= control target key start
LH: loop header
LB: loop body
LE: loop exit
PB: predicated region body
PF: predicated region fallthrough
CT: control target
= control target key end

     0   :  { %s34_s12 = smov [#allocation2]   ;;  %s35_s13 = smov [#allocation3]   ;;  %s53_s0 = inlined_call_operand.hbm [shape: f32[2,4,16,16], index: 0, kind: input, shape index: {}]   ;;  %s54_s1 = inlined_call_operand.hbm [shape: f32[2,4,16,16], index: 1, kind: output, shape index: {}]  }
   0x1   :  { %s10_s8 = sshll.u32 %s53_s0, 4  ;;  %s12_s11 = sshll.u32 %s54_s1, 4  ;;  %s11_s8 = int_to_ptr.hbm [resolvable:$true] %s10_s8  ;;  %s13_s11 = int_to_ptr.hbm [resolvable:$true] %s12_s11 }
   0x2   :  { %s36_s14 = smov 0  }
   0x3   :  { %16 = dma.general %s11_s8, 2048, %s13_s11, %s34_s12, %s35_s13, [#allocation4], %s36_s14, 0  }
   0x4   :  { %32 = dma.done.wait [#allocation2], 2048 }
   0x5   :  { %33 = vsyncadd [#allocation2], 4294965248 }
   0x6   :  { %22 = vsyncmov [#allocation2] }
   0x9   :  { %s23_s15 = vpop.sfrf %22 }
   0xa   :  { %p28_p0 = scmp.ne.s32.totalorder %s23_s15, 0 }
   0xc   :  { %27 = shalt.err (%p28_p0)  }

</bundles_post_ra>
